<compile_context>
chip_gen: v5e
topology: v5e:2x2
jax: 0.10.0
libtpu: 0.0.40
codegen_flags: <defaults>
</compile_context>

<pallas_src>
import functools

import jax
import jax.numpy as jnp
from jax.experimental import pallas as pl
from jax.experimental.pallas import tpu as pltpu


def _scale_shift_kernel(scale_ref, shift_ref, x_ref, o_ref):
    # scale/shift are (1,) f32 scalars in SMEM (same dtype as the PyTorch
    # buffers). Compute in f32, cast once to the (possibly promoted) out dtype.
    s = scale_ref[0]
    b = shift_ref[0]
    o_ref[...] = (x_ref[...].astype(jnp.float32) * s + b).astype(o_ref.dtype)


def _ceil_div(a, b):
    return -(-a // b)


def _round_up(a, b):
    return _ceil_div(a, b) * b


def _choose_lane(total, row_align):
    """Widest lane-dense (multiple-of-128) last dim dividing the element count.

    Prefers widths that keep rows >= the sublane packing so blocks are not
    sublane-sparse; falls back to any divisor (block rows == full array dim is
    always layout-legal)."""
    widths = (2048, 1024, 512, 256, 128)
    for w in widths:
        if total % w == 0 and (total // w) >= row_align:
            return w
    for w in widths:
        if total % w == 0:
            return w
    return None


def _vmem_capacity_bytes():
    # Trace-time hardware query; conservative (v7x-sized) default if it fails.
    try:
        return int(pltpu.get_tpu_info().vmem_capacity_bytes)
    except Exception:  # pragma: no cover
        return 64 << 20


@functools.partial(jax.jit, static_argnames=("preserve_dtype",))
def scale_layer(x, scale, shift, *, preserve_dtype=False):
    """y = x * scale + shift, matching ScaleLayer.forward semantics.

    preserve_dtype=True (opt-in) keeps the output in x.dtype instead of the
    PyTorch/JAX promoted dtype (e.g. bf16 in -> bf16 out), halving write
    bandwidth for low-precision activations."""
    orig_shape = x.shape
    total = x.size
    scale_f = jnp.asarray(scale, jnp.float32).reshape(-1)
    shift_f = jnp.asarray(shift, jnp.float32).reshape(-1)
    if preserve_dtype:
        out_dtype = x.dtype
    else:
        out_dtype = jnp.result_type(x.dtype, scale.dtype, shift.dtype)
    if total == 0:
        return jnp.zeros(orig_shape, out_dtype)

    in_b = jnp.dtype(x.dtype).itemsize
    out_b = jnp.dtype(out_dtype).itemsize
    # Sublane packing of the narrower of in/out dtype: 8 f32, 16 bf16, 32 int8.
    row_align = max(8, 32 // min(in_b, out_b))

    vmem_cap = _vmem_capacity_bytes()
    is_v7x_like = vmem_cap < (96 << 20)  # 64 MiB/TC (v7x) vs 128 MiB (v5e/v6e)
    target_step_bytes = (12 << 20) if is_v7x_like else (16 << 20)
    vmem_ceiling = (44 << 20) if is_v7x_like else (64 << 20)

    lane = _choose_lane(total, row_align)
    if lane is not None:
        # Fast path: zero-copy reshape to a lane-dense slab, no padding.
        rows, cols = total // lane, lane
        bc = cols
        br = max(row_align,
                 (target_step_bytes // (cols * (in_b + out_b)))
                 // row_align * row_align)
        if br >= rows:
            if is_v7x_like and rows >= 2 * row_align:
                # Split into >=2 steps so both v7x TensorCores get work.
                br = min(rows, _round_up(_ceil_div(rows, 2), row_align))
            else:
                # Single-TensorCore chips: one step, no extra per-step overhead.
                br = rows
        step_vmem = br * bc * (in_b + out_b)
    else:
        # Ragged element count: view as one (1, total) row and tile along the
        # lane axis; the partial last block is masked by Pallas. No pad/slice
        # (each of which would cost an extra full HBM pass).
        rows, cols = 1, total
        br = 1
        # A (1, bc) block still occupies 8 sublanes in VMEM -> budget for 8x.
        bc = max(128, (target_step_bytes // (8 * (in_b + out_b))) // 128 * 128)
        if bc >= cols:
            if is_v7x_like and cols >= 2 * 128:
                bc = min(cols, _round_up(_ceil_div(cols, 2), 128))
            else:
                bc = cols  # block == full dim: always layout-legal
        step_vmem = 8 * bc * (in_b + out_b)

    # ~2.5x the per-step bytes (covers the double-buffered in+out tiles),
    # clamped to the generation-specific scoped-VMEM ceiling.
    vmem_limit = int(min(vmem_ceiling, max(32 << 20, (5 * step_vmem) // 2)))

    grid = (pl.cdiv(rows, br), pl.cdiv(cols, bc))
    x2d = x.reshape(rows, cols)

    out2d = pl.pallas_call(
        _scale_shift_kernel,
        out_shape=jax.ShapeDtypeStruct((rows, cols), out_dtype),
        grid_spec=pltpu.PrefetchScalarGridSpec(
            num_scalar_prefetch=0,
            grid=grid,
            in_specs=[
                pl.BlockSpec(memory_space=pltpu.SMEM),        # scale (1,)
                pl.BlockSpec(memory_space=pltpu.SMEM),        # shift (1,)
                pl.BlockSpec((br, bc), lambda i, j: (i, j)),  # x slab
            ],
            out_specs=pl.BlockSpec((br, bc), lambda i, j: (i, j)),
        ),
        compiler_params=pltpu.CompilerParams(
            # TODO(synk): if profiling shows v7x not core-sharding this grid,
            # switch the leading axis to pltpu.CORE_PARALLEL.
            dimension_semantics=("parallel", "parallel"),
            vmem_limit_bytes=vmem_limit,
        ),
    )(scale_f, shift_f, x2d)

    return out2d.reshape(orig_shape)


if __name__ == "__main__":
    key = jax.random.PRNGKey(0)

    # Deterministic buffers exactly as in ScaleLayer.__init__.
    scale = jnp.array([0.9], dtype=jnp.float32)
    shift = jnp.array([0.1], dtype=jnp.float32)

    # Primary small test (NCHW as in the PyTorch usage).
    x = jax.random.normal(key, (2, 4, 16, 16), dtype=jnp.float32)
    y = jax.block_until_ready(scale_layer(x, scale, shift))
    y_ref = x * scale + shift
    assert y.shape == x.shape and y.dtype == y_ref.dtype
    assert jnp.allclose(y, y_ref, atol=1e-6, rtol=1e-6)

    # Multi-block grid with a partial last block along rows.
    x2 = jax.random.normal(jax.random.PRNGKey(1), (4, 8, 32, 33), dtype=jnp.float32)
    y2 = jax.block_until_ready(scale_layer(x2, scale, shift))
    assert jnp.allclose(y2, x2 * scale + shift, atol=1e-6, rtol=1e-6)

    # Ragged element count (no-pad (1, total) path).
    x3 = jax.random.normal(jax.random.PRNGKey(2), (3, 5, 7), dtype=jnp.float32)
    y3 = jax.block_until_ready(scale_layer(x3, scale, shift))
    assert jnp.allclose(y3, x3 * scale + shift, atol=1e-6, rtol=1e-6)

    # bf16 input: default keeps the promoted f32 output contract ...
    xb = jax.random.normal(jax.random.PRNGKey(3), (2, 4, 16, 16), dtype=jnp.bfloat16)
    yb = jax.block_until_ready(scale_layer(xb, scale, shift))
    yb_ref = xb * scale + shift
    assert yb.dtype == yb_ref.dtype
    assert jnp.allclose(yb.astype(jnp.float32), yb_ref.astype(jnp.float32),
                        atol=1e-2, rtol=1e-2)

    # ... and preserve_dtype=True opts into the bandwidth-saving bf16 output.
    yb16 = jax.block_until_ready(scale_layer(xb, scale, shift, preserve_dtype=True))
    assert yb16.dtype == jnp.bfloat16
    assert jnp.allclose(yb16.astype(jnp.float32), yb_ref.astype(jnp.float32),
                        atol=1e-2, rtol=1e-2)

    print("KERNEL_OK")
</pallas_src>

<mosaic_0001>
module attributes {stable_mosaic.version = 11 : i64} {
  func.func @_scale_shift_kernel(%arg0: i32, %arg1: i32, %arg2: memref<1xf32, #tpu.memory_space<smem>>, %arg3: memref<1xf32, #tpu.memory_space<smem>>, %arg4: memref<8x256xf32, #tpu.memory_space<vmem>>, %arg5: memref<8x256xf32, #tpu.memory_space<vmem>>) attributes {dimension_semantics = [#tpu.dimension_semantics<parallel>, #tpu.dimension_semantics<parallel>], iteration_bounds = array<i64: 1, 1>, scalar_prefetch = 0 : i64, scratch_operands = 0 : i64, tpu.core_type = #tpu.core_type<tc>, window_params = [{transform_indices = @transform_0, window_bounds = array<i64: 1>}, {transform_indices = @transform_1, window_bounds = array<i64: 1>}, {transform_indices = @transform_2, window_bounds = array<i64: 8, 256>}, {transform_indices = @transform_3, window_bounds = array<i64: 8, 256>}]} {
    %c0 = arith.constant 0 : index
    %0 = memref.load %arg2[%c0] : memref<1xf32, #tpu.memory_space<smem>>
    %c0_0 = arith.constant 0 : index
    %1 = memref.load %arg3[%c0_0] : memref<1xf32, #tpu.memory_space<smem>>
    %c0_1 = arith.constant 0 : index
    %c0_2 = arith.constant 0 : index
    %2 = vector.load %arg4[%c0_1, %c0_2] : memref<8x256xf32, #tpu.memory_space<vmem>>, vector<8x256xf32>
    %3 = vector.broadcast %0 : f32 to vector<8x256xf32>
    %4 = arith.mulf %2, %3 : vector<8x256xf32>
    %5 = vector.broadcast %1 : f32 to vector<8x256xf32>
    %6 = arith.addf %4, %5 : vector<8x256xf32>
    %c0_3 = arith.constant 0 : index
    %c0_4 = arith.constant 0 : index
    %7 = vector.load %arg5[%c0_3, %c0_4] : memref<8x256xf32, #tpu.memory_space<vmem>>, vector<8x256xf32>
    tpu.vector_store %arg5[%c0_3, %c0_4], %6 {strides = array<i32>} : memref<8x256xf32, #tpu.memory_space<vmem>>, vector<8x256xf32>,
    return
  }
  func.func @transform_0(%arg0: i32, %arg1: i32) -> i32 {
    %c0_i32 = arith.constant 0 : i32
    %c0_i32_0 = arith.constant 0 : i32
    return %c0_i32 : i32
  }
  func.func @transform_1(%arg0: i32, %arg1: i32) -> i32 {
    %c0_i32 = arith.constant 0 : i32
    %c0_i32_0 = arith.constant 0 : i32
    return %c0_i32 : i32
  }
  func.func @transform_2(%arg0: i32, %arg1: i32) -> (i32, i32) {
    %c0_i32 = arith.constant 0 : i32
    return %arg0, %arg1 : i32, i32
  }
  func.func @transform_3(%arg0: i32, %arg1: i32) -> (i32, i32) {
    %c0_i32 = arith.constant 0 : i32
    return %arg0, %arg1 : i32, i32
  }
}

</mosaic_0001>

<bundles_post_ra>
// kernel: scale_layer.1
= control target key start
LH: loop header
LB: loop body
LE: loop exit
PB: predicated region body
PF: predicated region fallthrough
CT: control target
= control target key end

     0   :  { %s70_s0 = inlined_call_operand.<no memory space> [shape: f32[1], index: 0, kind: input, shape index: {}]   ;;  %s71_s1 = inlined_call_operand.<no memory space> [shape: f32[1], index: 1, kind: input, shape index: {}]   ;;  %s72_s2 = inlined_call_operand.vmem [shape: f32[8,256], index: 2, kind: input, shape index: {}]   ;;  %s73_s3 = inlined_call_operand.vmem [shape: f32[8,256], index: 3, kind: output, shape index: {}]  }
   0x1   :  { %v18_v0 = vld [vmem:[%s72_s2] sm:$0xff]  ;;  %v20_v1 = vstv %s70_s0  ;;  %v23_v2 = vstv %s71_s1  ;;  %v19_v3 = vld [vmem:[%s72_s2 + $0x8] sm:$0xff] }
   0x2   :  { %v21_v4 = vmul.f32 %v20_v1, %v18_v0  ;;  %v22_v5 = vmul.f32 %v20_v1, %v19_v3 }
   0x4   :  { %v24_v6 = vadd.f32 %v23_v2, %v21_v4  ;;  %v25_v7 = vadd.f32 %v23_v2, %v22_v5 }
   0x6   :  { %26 = vst [vmem:[%s73_s3] sm:$0xff] %v24_v6 }
   0x7   :  { %27 = vst [vmem:[%s73_s3 + $0x8] sm:$0xff] %v25_v7 }

</bundles_post_ra>
